<compile_context>
chip_gen: v6e
topology: v6e:2x2x1
jax: 0.10.0
libtpu: 0.0.40
codegen_flags: <defaults>
</compile_context>

<pallas_src>
import functools

import jax
import jax.numpy as jnp
from jax.experimental import pallas as pl
from jax.experimental.pallas import tpu as pltpu


def _round_up(x, m):
    return ((x + m - 1) // m) * m


def _asl_focal_kernel(x_ref, lab_ref, o_ref, acc_ref, *,
                      gamma, eps, num_classes, batch, tile_b):
    pid = pl.program_id(0)

    @pl.when(pid == 0)
    def _init():
        acc_ref[...] = jnp.zeros_like(acc_ref)

    x = x_ref[...].astype(jnp.float32)            # (TB, C) logits
    labels = lab_ref[...]                         # (TB, 1) int32

    # Build the one-hot target mask in-kernel (1 bit of info per row).
    cls = jax.lax.broadcasted_iota(jnp.int32, x.shape, 1)
    t = (cls == labels).astype(jnp.float32)       # (TB, C)

    # log-softmax along classes; reuse exp(shifted) for the probabilities so
    # there is exactly one full-tile exp and one per-row log on the EUP.
    m = jnp.max(x, axis=-1, keepdims=True)
    shifted = x - m
    e = jnp.exp(shifted)                          # (TB, C)
    s = jnp.sum(e, axis=-1, keepdims=True)        # (TB, 1)
    log_preds = shifted - jnp.log(s)              # (TB, C)
    xs = e * (1.0 / s)                            # softmax probs (exact recip)

    # asymmetric weight:
    #   base = 1 - xs*t - (1-xs)*(1-t) = t + xs - 2*t*xs
    #   exponent = gamma*t + gamma*(1-t) == gamma (scalar), so pow -> square
    base = t + xs - 2.0 * t * xs
    if float(gamma) == 2.0:
        w = base * base
    else:
        w = jnp.power(base, jnp.float32(gamma))
    log_preds_w = log_preds * w

    # loss = -5000 * (t*(1-eps) + eps/C) * log_preds_w, constants folded.
    c1 = jnp.float32(-5000.0 * (1.0 - eps))
    c0 = jnp.float32(-5000.0 * eps / num_classes)
    loss = (c1 * t + c0) * log_preds_w            # (TB, C)
    row_loss = jnp.sum(loss, axis=-1, keepdims=True)   # (TB, 1)

    # Mask rows beyond the true batch (remainder tile of the grid).
    row_idx = pid * tile_b + jax.lax.broadcasted_iota(jnp.int32, row_loss.shape, 0)
    row_loss = jnp.where(row_idx < batch, row_loss, 0.0)

    acc_ref[...] += jnp.sum(row_loss).reshape(1, 1)

    @pl.when(pid == pl.num_programs(0) - 1)
    def _finalize():
        o_ref[...] = acc_ref[...] / jnp.float32(batch)


def asl_focal_loss(inputs, labels, gamma=2.0, eps=0.1, tile_b=None):
    """inputs: (B, C) logits; labels: (B,) int class ids. Returns scalar mean loss."""
    B, C = inputs.shape
    itemsize = jnp.dtype(inputs.dtype).itemsize

    if tile_b is None:
        # Keep the double-buffered logits tile comfortably inside the scoped
        # VMEM limit on all generations (incl. v7x's smaller VMEM).
        budget = 8 * 1024 * 1024
        tb = max(8, min(1024, (budget // (2 * C * itemsize)) // 8 * 8))
        tile_b = min(tb, _round_up(B, 8))
    tile_b = max(8, _round_up(tile_b, 8))

    num_tiles = pl.cdiv(B, tile_b)
    labels2d = labels.astype(jnp.int32).reshape(B, 1)

    kernel = functools.partial(
        _asl_focal_kernel,
        gamma=float(gamma), eps=float(eps),
        num_classes=C, batch=B, tile_b=tile_b,
    )

    out = pl.pallas_call(
        kernel,
        out_shape=jax.ShapeDtypeStruct((1, 1), jnp.float32),
        grid=(num_tiles,),
        in_specs=[
            pl.BlockSpec((tile_b, C), lambda i: (i, 0)),   # logits, native dtype
            pl.BlockSpec((tile_b, 1), lambda i: (i, 0)),   # int32 labels
        ],
        out_specs=pl.BlockSpec((1, 1), lambda i: (0, 0)),  # resident accumulator out
        scratch_shapes=[pltpu.VMEM((1, 1), jnp.float32)],
        compiler_params=pltpu.CompilerParams(
            dimension_semantics=("arbitrary",),            # reduction over batch tiles
        ),
    )(inputs, labels2d)
    return out[0, 0]


def _reference(inputs, labels, gamma=2.0, eps=0.1):
    """Pure-JAX literal mirror of the PyTorch forward (one-hot target)."""
    C = inputs.shape[-1]
    t = jax.nn.one_hot(labels, C, dtype=jnp.float32)
    log_preds = jax.nn.log_softmax(inputs.astype(jnp.float32), axis=-1)
    anti_t = 1.0 - t
    xs = jnp.exp(log_preds)
    xs_pos = xs * t
    xs_neg = (1.0 - xs) * anti_t
    w = jnp.power(1.0 - xs_pos - xs_neg, gamma * t + gamma * anti_t)
    log_preds = log_preds * w
    t_s = t * (1.0 - eps) + eps / C
    loss = (-5000.0 * t_s * log_preds).sum(-1)
    return loss.mean()


if __name__ == "__main__":
    key = jax.random.PRNGKey(0)
    k1, k2, k3, k4 = jax.random.split(key, 4)

    # Case 1: small single-tile case (batch=8, num_classes=32).
    B, C = 8, 32
    logits = jax.random.normal(k1, (B, C), dtype=jnp.float32)
    labels = jax.random.randint(k2, (B,), 0, C)

    loss = asl_focal_loss(logits, labels, gamma=2.0, eps=0.1)
    jax.block_until_ready(loss)
    ref = _reference(logits, labels, gamma=2.0, eps=0.1)
    assert jnp.allclose(loss, ref, rtol=1e-4, atol=1e-3), (loss, ref)

    # Case 2: multi-tile + remainder masking (batch=40 with tile_b=16).
    B2, C2 = 40, 32
    logits2 = jax.random.normal(k3, (B2, C2), dtype=jnp.float32)
    labels2 = jax.random.randint(k4, (B2,), 0, C2)

    loss2 = asl_focal_loss(logits2, labels2, gamma=2.0, eps=0.1, tile_b=16)
    jax.block_until_ready(loss2)
    ref2 = _reference(logits2, labels2, gamma=2.0, eps=0.1)
    assert jnp.allclose(loss2, ref2, rtol=1e-4, atol=1e-3), (loss2, ref2)

    print("KERNEL_OK")
</pallas_src>

<mosaic_0001>
module attributes {stable_mosaic.version = 11 : i64} {
  func.func @_asl_focal_kernel(%arg0: i32, %arg1: memref<8x32xf32, #tpu.memory_space<vmem>>, %arg2: memref<8x1xi32, #tpu.memory_space<vmem>>, %arg3: memref<1x1xf32, #tpu.memory_space<vmem>>, %arg4: memref<1x1xf32, #tpu.memory_space<vmem>>) attributes {dimension_semantics = [#tpu.dimension_semantics<arbitrary>], iteration_bounds = array<i64: 1>, scalar_prefetch = 0 : i64, scratch_operands = 1 : i64, tpu.core_type = #tpu.core_type<tc>, window_params = [{transform_indices = @transform_0, window_bounds = array<i64: 8, 32>}, {transform_indices = @transform_1, window_bounds = array<i64: 8, 1>}, {pipeline_mode = #tpu.pipeline_mode<synchronous>, transform_indices = @transform_2, window_bounds = array<i64: 1, 1>}]} {
    %c0_i32 = arith.constant 0 : i32
    %0 = arith.cmpi eq, %arg0, %c0_i32 : i32
    %1 = arith.extui %0 : i1 to i32
    %c0_i32_0 = arith.constant 0 : i32
    %2 = arith.cmpi ne, %1, %c0_i32_0 : i32
    scf.if %2 {
      %cst_19 = arith.constant 0.000000e+00 : f32
      %57 = vector.broadcast %cst_19 : f32 to vector<1x1xf32>
      %c0_20 = arith.constant 0 : index
      %c0_21 = arith.constant 0 : index
      %58 = vector.load %arg4[%c0_20, %c0_21] : memref<1x1xf32, #tpu.memory_space<vmem>>, vector<1x1xf32>
      tpu.vector_store %arg4[%c0_20, %c0_21], %57 {strides = array<i32>} : memref<1x1xf32, #tpu.memory_space<vmem>>, vector<1x1xf32>,
    } else {
    }
    %c0 = arith.constant 0 : index
    %c0_1 = arith.constant 0 : index
    %3 = vector.load %arg1[%c0, %c0_1] : memref<8x32xf32, #tpu.memory_space<vmem>>, vector<8x32xf32>
    %c0_2 = arith.constant 0 : index
    %c0_3 = arith.constant 0 : index
    %4 = vector.load %arg2[%c0_2, %c0_3] : memref<8x1xi32, #tpu.memory_space<vmem>>, vector<8x1xi32>
    %5 = tpu.iota {dimensions = array<i32: 1>} : vector<8x32xi32>
    %6 = vector.broadcast %4 : vector<8x1xi32> to vector<8x32xi32>
    %7 = arith.cmpi eq, %5, %6 : vector<8x32xi32>
    %8 = arith.extui %7 : vector<8x32xi1> to vector<8x32xi32>
    %9 = arith.sitofp %8 : vector<8x32xi32> to vector<8x32xf32>
    %cst = arith.constant dense<0xFF800000> : vector<8xf32>
    %10 = vector.multi_reduction <maximumf>, %3, %cst [1] : vector<8x32xf32> to vector<8xf32>
    %11 = vector.shape_cast %10 : vector<8xf32> to vector<8x1xf32>
    %12 = vector.broadcast %11 : vector<8x1xf32> to vector<8x32xf32>
    %13 = arith.subf %3, %12 : vector<8x32xf32>
    %14 = math.exp %13 : vector<8x32xf32>
    %cst_4 = arith.constant dense<0.000000e+00> : vector<8xf32>
    %15 = vector.multi_reduction <add>, %14, %cst_4 [1] : vector<8x32xf32> to vector<8xf32>
    %16 = vector.shape_cast %15 : vector<8xf32> to vector<8x1xf32>
    %17 = math.log %16 : vector<8x1xf32>
    %18 = vector.broadcast %17 : vector<8x1xf32> to vector<8x32xf32>
    %19 = arith.subf %13, %18 : vector<8x32xf32>
    %cst_5 = arith.constant 1.000000e+00 : f32
    %20 = vector.broadcast %cst_5 : f32 to vector<8x1xf32>
    %21 = arith.divf %20, %16 : vector<8x1xf32>
    %22 = vector.broadcast %21 : vector<8x1xf32> to vector<8x32xf32>
    %23 = arith.mulf %14, %22 : vector<8x32xf32>
    %24 = arith.addf %9, %23 : vector<8x32xf32>
    %cst_6 = arith.constant 2.000000e+00 : f32
    %25 = vector.broadcast %cst_6 : f32 to vector<8x32xf32>
    %26 = arith.mulf %25, %9 : vector<8x32xf32>
    %27 = arith.mulf %26, %23 : vector<8x32xf32>
    %28 = arith.subf %24, %27 : vector<8x32xf32>
    %29 = arith.mulf %28, %28 : vector<8x32xf32>
    %30 = arith.mulf %19, %29 : vector<8x32xf32>
    %cst_7 = arith.constant -4.500000e+03 : f32
    %31 = vector.broadcast %cst_7 : f32 to vector<8x32xf32>
    %32 = arith.mulf %31, %9 : vector<8x32xf32>
    %cst_8 = arith.constant -1.562500e+01 : f32
    %33 = vector.broadcast %cst_8 : f32 to vector<8x32xf32>
    %34 = arith.addf %32, %33 : vector<8x32xf32>
    %35 = arith.mulf %34, %30 : vector<8x32xf32>
    %cst_9 = arith.constant dense<0.000000e+00> : vector<8xf32>
    %36 = vector.multi_reduction <add>, %35, %cst_9 [1] : vector<8x32xf32> to vector<8xf32>
    %37 = vector.shape_cast %36 : vector<8xf32> to vector<8x1xf32>
    %c8_i32 = arith.constant 8 : i32
    %38 = arith.muli %arg0, %c8_i32 : i32
    %39 = tpu.iota {dimensions = array<i32: 0>} : vector<8x1xi32>
    %40 = vector.broadcast %38 : i32 to vector<8x1xi32>
    %41 = arith.addi %40, %39 : vector<8x1xi32>
    %c8_i32_10 = arith.constant 8 : i32
    %42 = vector.broadcast %c8_i32_10 : i32 to vector<8x1xi32>
    %43 = arith.cmpi slt, %41, %42 : vector<8x1xi32>
    %cst_11 = arith.constant 0.000000e+00 : f32
    %44 = vector.broadcast %cst_11 : f32 to vector<8x1xf32>
    %45 = arith.select %43, %37, %44 : vector<8x1xi1>, vector<8x1xf32>
    %c0_12 = arith.constant 0 : index
    %c0_13 = arith.constant 0 : index
    %46 = vector.load %arg4[%c0_12, %c0_13] : memref<1x1xf32, #tpu.memory_space<vmem>>, vector<1x1xf32>
    %47 = vector.shape_cast %45 : vector<8x1xf32> to vector<1x8x1xf32>
    %cst_14 = arith.constant dense<0.000000e+00> : vector<1xf32>
    %48 = vector.multi_reduction <add>, %47, %cst_14 [1, 2] : vector<1x8x1xf32> to vector<1xf32>
    %49 = vector.shape_cast %48 : vector<1xf32> to vector<1x1x1xf32>
    %50 = vector.extract %49[0, 0, 0] : f32 from vector<1x1x1xf32>
    %51 = vector.broadcast %50 : f32 to vector<1x1xf32>
    %52 = arith.addf %46, %51 : vector<1x1xf32>
    %c0_15 = arith.constant 0 : index
    %c0_16 = arith.constant 0 : index
    %53 = vector.load %arg4[%c0_15, %c0_16] : memref<1x1xf32, #tpu.memory_space<vmem>>, vector<1x1xf32>
    tpu.vector_store %arg4[%c0_15, %c0_16], %52 {strides = array<i32>} : memref<1x1xf32, #tpu.memory_space<vmem>>, vector<1x1xf32>,
    %c0_i32_17 = arith.constant 0 : i32
    %54 = arith.cmpi eq, %arg0, %c0_i32_17 : i32
    %55 = arith.extui %54 : i1 to i32
    %c0_i32_18 = arith.constant 0 : i32
    %56 = arith.cmpi ne, %55, %c0_i32_18 : i32
    scf.if %56 {
      %c0_19 = arith.constant 0 : index
      %c0_20 = arith.constant 0 : index
      %57 = vector.load %arg4[%c0_19, %c0_20] : memref<1x1xf32, #tpu.memory_space<vmem>>, vector<1x1xf32>
      %cst_21 = arith.constant 8.000000e+00 : f32
      %58 = vector.broadcast %cst_21 : f32 to vector<1x1xf32>
      %59 = arith.divf %57, %58 : vector<1x1xf32>
      %c0_22 = arith.constant 0 : index
      %c0_23 = arith.constant 0 : index
      %60 = vector.load %arg3[%c0_22, %c0_23] : memref<1x1xf32, #tpu.memory_space<vmem>>, vector<1x1xf32>
      tpu.vector_store %arg3[%c0_22, %c0_23], %59 {strides = array<i32>} : memref<1x1xf32, #tpu.memory_space<vmem>>, vector<1x1xf32>,
    } else {
    }
    return
  }
  func.func @transform_0(%arg0: i32) -> (i32, i32) {
    %c0_i32 = arith.constant 0 : i32
    %c0_i32_0 = arith.constant 0 : i32
    return %arg0, %c0_i32 : i32, i32
  }
  func.func @transform_1(%arg0: i32) -> (i32, i32) {
    %c0_i32 = arith.constant 0 : i32
    %c0_i32_0 = arith.constant 0 : i32
    return %arg0, %c0_i32 : i32, i32
  }
  func.func @transform_2(%arg0: i32) -> (i32, i32) {
    %c0_i32 = arith.constant 0 : i32
    %c0_i32_0 = arith.constant 0 : i32
    %c0_i32_1 = arith.constant 0 : i32
    return %c0_i32, %c0_i32_0 : i32, i32
  }
}

</mosaic_0001>

<bundles_post_ra>
// kernel: tpu_custom_call.1
= control target key start
LH: loop header
LB: loop body
LE: loop exit
PB: predicated region body
PF: predicated region fallthrough
CT: control target
= control target key end

     0   :  { %vm28_vm0 = vcmask 261120   ;;  %s169_s0 = inlined_call_operand.vmem [shape: f32[8,32], index: 0, kind: input, shape index: {}]   ;;  %s170_s1 = inlined_call_operand.vmem [shape: s32[8,1], index: 1, kind: input, shape index: {}]   ;;  %s171_s2 = inlined_call_operand.hbm [shape: f32[1,1], index: 2, kind: output, shape index: {}]  }
   0x1   :  { %v18_v0 = vld [vmem:[%s169_s0] sm:$0xff] }
   0x2   :  { %7 = vsyncpa [#allocation4], 0  ;;  %v29_v1 = vsel %vm28_vm0, %v18_v0, -inf  ;;  %v19_v2 = vld [vmem:[%s170_s1] sm:$0xff]  ;;  %v136_v3 = vmov 0   ;;  %vm16_vm1 = vcmask 0   ;;  %v20_v11 = vlaneseq }
   0x3   :  { %30 = vmax.xlane.f32.xlu0 %v29_v1  ;;  %106 = vset.pattern.permute.xlu1 %v136_v3  ;;  %v137_v9 = vmov 0.0   ;;  %vm64_vm3 = vcmask 7168   ;;  %s138_s1 = smov [#allocation3]  }
   0x4   :  { %107 = vset.pattern.permute.xlu0 %v136_v3  ;;  %23 = vperm.xlu1 %106, %v19_v2   ;;  %17 = vst.msk [vmem:[#allocation2] sm:$0x1] %vm16_vm1, %v137_v9  ;;  %v21_v12 = vand.u32 127, %v20_v11  ;;  %s92_s13 = sshll.u32 %s138_s1, 4  ;;  %s93_s13 = int_to_ptr.vmem [resolvable:$true] %s92_s13 }
   0x5   :  { %s114_s14 = scalar_lea.vmem %s93_s13, 16  ;;  %s118_s15 = scalar_lea.vmem %s93_s13, 32 }
   0x6   :  { %p115_p0 = scmp.ne.s32.totalorder %s93_s13, %s114_s14  ;;  %p119_p1 = scmp.lt.s32.totalorder %s93_s13, %s93_s13 }
   0x7   :  { %p120_p2 = scmp.lt.s32.totalorder %s118_s15, %s114_s14 }
   0x9   :  { %p121_p3 = por %p120_p2, %p119_p1 }
   0xb   :  { %v63_v39 = vld [vmem:[#allocation2] sm:$0x1]  ;;  %p122_p4 = pnand %p121_p3, %p115_p0 }
  0x7f   :  { %v24_v13 = vpop.permute.xlu1 %23 }
  0x80   :  { %vm25_vm2 = vcmp.eq.s32.totalorder %v21_v12, %v24_v13 }
  0x81   :  { %v100_v14 = vsel %vm25_vm2, 1.0, %v137_v9 }
  0x82   :  { %v45_v16 = vmul.f32 2.0, %v100_v14  ;;  %v50_v23 = vmul.f32 -4500.0, %v100_v14 }
  0x84   :  { %v51_v26 = vadd.f32 -15.625, %v50_v23 }
  0x8c   :  { %v31_v4 = vpop.xlane.xlu0 %30 }
  0x8d   :  { %v32_v5 = vsub.f32 %v18_v0, %v31_v4 }
  0x8f   :  { %v33_v6 = vmul.f32 1.442695, %v32_v5 }
  0x91   :  { %108 = vpow2.f32 %v33_v6 }
  0x9e   :  { %v109_v7 = vpop.eup %108 }
  0x9f   :  { %v35_v8 = vsel %vm28_vm0, %v109_v7, 0.0 }
  0xa0   :  { %36 = vadd.xlane.f32.xlu0 %v35_v8 }
 0x129   :  { %v37_v10 = vpop.xlane.xlu0 %36 }
 0x12a   :  { %110 = vlog2.f32 %v37_v10 }
 0x12b   :  { %112 = vrcp.f32 %v37_v10 }
 0x137   :  { %v111_v15 = vpop.eup %110 }
 0x138   :  { %v113_v17 = vpop.eup %112  ;;  %v39_v19 = vmul.f32 0.6931472, %v111_v15 }
 0x139   :  { %v43_v18 = vmul.f32 %v113_v17, %v109_v7 }
 0x13a   :  { %v40_v25 = vsub.f32 %v32_v5, %v39_v19 }
 0x13b   :  { %v44_v20 = vadd.f32 %v100_v14, %v43_v18  ;;  %v46_v21 = vmul.f32 %v45_v16, %v43_v18 }
 0x13d   :  { %v47_v22 = vsub.f32 %v44_v20, %v46_v21 }
 0x13f   :  { %v48_v24 = vmul.f32 %v47_v22, %v47_v22 }
 0x141   :  { %v49_v27 = vmul.f32 %v48_v24, %v40_v25 }
 0x143   :  { %v52_v28 = vmul.f32 %v51_v26, %v49_v27 }
 0x145   :  { %v53_v29 = vsel %vm28_vm0, %v52_v28, 0.0 }
 0x146   :  { %54 = vadd.xlane.f32.xlu1 %v53_v29 }
 0x1cf   :  { %v55_v30 = vpop.xlane.xlu1 %54 }
 0x1d0   :  { %v65_v31 = vsel %vm64_vm3, %v55_v30, 0.0 }
 0x1d1   :  { %66 = vadd.xlane.f32.xlu0 %v65_v31 }
 0x25a   :  { %v67_v32 = vpop.xlane.xlu0 %66 }
 0x25b   :  { %v68_v33 = vrot.slane %v67_v32, 4 }
 0x25d   :  { %v69_v34 = vadd.f32 %v68_v33, %v67_v32 }
 0x25f   :  { %v70_v35 = vrot.slane %v69_v34, 2 }
 0x261   :  { %v71_v36 = vadd.f32 %v70_v35, %v69_v34 }
 0x263   :  { %v72_v37 = vrot.slane %v71_v36, 1 }
 0x265   :  { %v73_v38 = vadd.f32 %v72_v37, %v71_v36 }
 0x267   :  { %101 = vpush %v73_v38 }
 0x298   :  { %s102_s0 = spop %101 }
 0x299   :  { %v75_v40 = vstv %s102_s0 }
 0x29a   :  { %v76_v41 = vadd.f32 %v75_v40, %v63_v39 }
 0x29c   :  { %78 = vst.msk [vmem:[#allocation2] sm:$0x1] %vm16_vm1, %v76_v41 }
 0x2a3   :  { %v82_v42 = vld [vmem:[#allocation2] sm:$0x1] }
 0x2a4   :  { %v84_v43 = vmul.f32 0.125, %v82_v42 }
 0x2a6   :  { %85 = vst.msk [vmem:[#allocation3] sm:$0x1] %vm16_vm1, %v84_v43 }
 0x2a7   :  { %125 = shalt.err (!%p122_p4)
}
 0x2a8   :  { %95 = dma.vmem_to_hbm [thread:$0]  %s93_s13, 16, %s171_s2, [#allocation4]  }
 0x2a9   :  { %134 = dma.done.wait [#allocation4], 16  }
 0x2aa   :  { %135 = vsyncadd [#allocation4], 4294967280 }
 0x2ab   :  { %99 = vsyncpa [#allocation4], 1 }

</bundles_post_ra>
